<compile_context>
chip_gen: v7x
topology: tpu7x:2x2x1
jax: 0.10.0
libtpu: 0.0.40
codegen_flags: <defaults>
</compile_context>

<pallas_src>
import functools

import numpy as np

import jax
import jax.numpy as jnp
from jax.experimental import pallas as pl
from jax.experimental.pallas import tpu as pltpu


def _round_up(x, m):
    return (x + m - 1) // m * m


_NEG_BIG = float(np.finfo(np.float32).min)

# Explicit VMEM budget: safe on v7x (64 MiB physical) and raises v5e's 16 MiB
# scoped default so larger spatial tiles keep double-buffering alive.
_VMEM_LIMIT_BYTES = 48 << 20
# Cap for the streamed-x double buffer used when picking the spatial tile.
_X_DBUF_BUDGET_BYTES = 12 << 20


def _pick_spatial_tiling(s_valid, s_phys, c, itemsize, s_tile=None):
    """Pick (s_tile, n_s).  Prefer one full-extent block; else 128-aligned tiles."""
    full_bytes = 2 * c * s_phys * itemsize
    if s_tile is None:
        # One full-extent block: no running-max pass, no partial-tile handling,
        # fewest grid steps.  Accept a modest over-read past the valid window.
        if full_bytes <= _X_DBUF_BUDGET_BYTES and s_phys <= _round_up(s_valid, 512):
            return s_phys, 1
        cap = max(128, (_X_DBUF_BUDGET_BYTES // (2 * c * itemsize)) // 128 * 128)
        s_tile = min(_round_up(s_valid, 128), 2048, cap)
    else:
        s_tile = max(128, _round_up(int(s_tile), 128))
    if s_tile >= s_phys:
        return s_phys, 1           # full extent (block_shape == array extent)
    return s_tile, pl.cdiv(s_valid, s_tile)


def _dfb_kernel(x_ref, w_ref, wh_ref, bh_ref, o_ref, m_acc, *, n_s, last_valid):
    # x_ref:  (1, C, TS)   input dtype (native)
    # w_ref:  (K, C)       fused DFB filter banks (all tasks)
    # wh_ref: (N2, K) f32  fused heads: rows [0:N) mean-pool, [N:2N) classifier
    # bh_ref: (N2, 1) f32  fused bias (zeros for the mean-pool half)
    # o_ref:  (1, N2, 1) f32 ; m_acc: (K, 1) f32 scratch (running max)
    y = jnp.dot(w_ref[...], x_ref[0], preferred_element_type=jnp.float32)  # (K, TS)

    def finalize(m):                                       # m: (K, 1) f32
        out = jnp.dot(wh_ref[...], m, preferred_element_type=jnp.float32)
        out = out + bh_ref[...]                            # (N2, 1)
        o_ref[...] = out[None].astype(o_ref.dtype)         # (1, N2, 1)

    def valid_cols(t):
        # Static slice excludes columns past the single MaxPool3d window (and
        # any partial-block garbage); slice before the max, never after.
        return t if last_valid >= t.shape[1] else t[:, :last_valid]

    if n_s == 1:
        finalize(valid_cols(y).max(axis=1, keepdims=True))
    else:
        s = pl.program_id(1)

        @pl.when(s == 0)
        def _():
            m_acc[...] = jnp.full(m_acc.shape, _NEG_BIG, dtype=m_acc.dtype)

        @pl.when(s < n_s - 1)                              # full steady-state tiles
        def _():
            m_acc[...] = jnp.maximum(m_acc[...], y.max(axis=1, keepdims=True))

        @pl.when(s == n_s - 1)                             # (possibly partial) last tile
        def _():
            m = jnp.maximum(m_acc[...],
                            valid_cols(y).max(axis=1, keepdims=True))
            finalize(m)


def multitask_dfb_forward(x, w_dfb, w_head_t, b_head, *, s_valid, s_tile=None):
    """x: (B, C, S_phys) native dtype; returns (B, 2*N_total) f32."""
    B, C, S_phys = x.shape
    K = w_dfb.shape[0]
    N2 = w_head_t.shape[0]
    itemsize = x.dtype.itemsize

    s_tile, n_s = _pick_spatial_tiling(s_valid, S_phys, C, itemsize, s_tile)
    last_valid = s_valid - (n_s - 1) * s_tile
    assert 0 < last_valid <= s_tile

    kernel = functools.partial(_dfb_kernel, n_s=n_s, last_valid=last_valid)

    flops = 2 * B * n_s * s_tile * C * K + 2 * B * N2 * K
    bytes_accessed = (B * C * min(n_s * s_tile, S_phys) * itemsize
                      + w_dfb.size * w_dfb.dtype.itemsize
                      + (w_head_t.size + b_head.size) * 4
                      + B * N2 * 4)

    out = pl.pallas_call(
        kernel,
        out_shape=jax.ShapeDtypeStruct((B, N2, 1), jnp.float32),
        grid_spec=pltpu.PrefetchScalarGridSpec(
            num_scalar_prefetch=0,
            grid=(B, n_s),
            in_specs=[
                pl.BlockSpec((1, C, s_tile), lambda b, s: (b, 0, s)),
                pl.BlockSpec((K, C), lambda b, s: (0, 0)),
                pl.BlockSpec((N2, K), lambda b, s: (0, 0)),
                pl.BlockSpec((N2, 1), lambda b, s: (0, 0)),
            ],
            out_specs=pl.BlockSpec((1, N2, 1), lambda b, s: (b, 0, 0)),
            scratch_shapes=[pltpu.VMEM((K, 1), jnp.float32)],
        ),
        compiler_params=pltpu.CompilerParams(
            dimension_semantics=("parallel", "arbitrary"),
            vmem_limit_bytes=_VMEM_LIMIT_BYTES),
        cost_estimate=pl.CostEstimate(
            flops=int(flops), transcendentals=0,
            bytes_accessed=int(bytes_accessed)),
    )(x, w_dfb, w_head_t, b_head)

    return out[:, :, 0]                                    # (B, N2)


class MultitaskDFBClassifiersPallas:
    """JAX/Pallas port of the PyTorch MultitaskDFBClassifiers (inference forward)."""

    def __init__(self, last_conv_size, num_classes, max_kernel, dropout,
                 num_dc=5, key=None):
        self.num_classes = [n for n in num_classes if n > 0]
        self.num_dc = num_dc
        if isinstance(max_kernel, int):
            max_kernel = (max_kernel,) * 3
        self.max_kernel = tuple(max_kernel)
        self.dropout = dropout  # TODO(synk): dropout is identity at inference.
        C = last_conv_size
        self.in_channels = C
        if key is None:
            key = jax.random.PRNGKey(0)

        # ---- per-task parameters (PyTorch-style init), kept for reference ----
        self.w_dfb, self.w_cls, self.b_cls = [], [], []
        keys = jax.random.split(key, max(len(self.num_classes), 1))
        for i, n_cls in enumerate(self.num_classes):
            k_i = n_cls * num_dc
            k1, k2, k3 = jax.random.split(keys[i], 3)
            conv_bound = 1.0 / float(np.sqrt(C))
            lin_bound = 1.0 / float(np.sqrt(k_i))
            self.w_dfb.append(jax.random.uniform(
                k1, (k_i, C), jnp.float32, -conv_bound, conv_bound))
            self.w_cls.append(jax.random.uniform(
                k2, (n_cls, k_i), jnp.float32, -lin_bound, lin_bound))
            self.b_cls.append(jax.random.uniform(
                k3, (n_cls,), jnp.float32, -lin_bound, lin_bound))

        # ---- stack all tasks into fused operands (no host transposes) ----
        K_total = sum(n * num_dc for n in self.num_classes)
        N_total = sum(self.num_classes)
        self.K_total, self.N_total = K_total, N_total

        if K_total > 0:
            w_dfb_fused = np.zeros((K_total, C), np.float32)
            w_head_t = np.zeros((2 * N_total, K_total), np.float32)  # rows: [mean | max]
            b_head = np.zeros((2 * N_total, 1), np.float32)
            koff = noff = 0
            for i, n_cls in enumerate(self.num_classes):
                k_i = n_cls * num_dc
                w_dfb_fused[koff:koff + k_i, :] = np.asarray(self.w_dfb[i])
                for n_local in range(n_cls):
                    w_head_t[noff + n_local,
                             koff + n_local * num_dc: koff + (n_local + 1) * num_dc] = 1.0 / num_dc
                w_head_t[N_total + noff: N_total + noff + n_cls,
                         koff:koff + k_i] = np.asarray(self.w_cls[i])
                b_head[N_total + noff: N_total + noff + n_cls, 0] = np.asarray(self.b_cls[i])
                koff += k_i
                noff += n_cls
            self.w_dfb_fused = jnp.asarray(w_dfb_fused)        # (K, C)
            self.w_head_t = jnp.asarray(w_head_t)              # (2N, K) f32
            self.b_head = jnp.asarray(b_head)                  # (2N, 1) f32

    def __call__(self, h, s_tile=None):
        B, C, D, H, W = h.shape
        assert C == self.in_channels
        if not self.num_classes:
            return [], []
        kD, kH, kW = self.max_kernel
        # MaxPool3d(max_kernel, stride=(num_dc,1,1)) must produce a 1x1x1 map
        # for the fixed-size Linear to be shape-consistent (single window at
        # the origin).  This also makes the window a flattened prefix.
        if not (H == kH and W == kW and kD <= D < kD + self.num_dc):
            raise ValueError(
                "MultitaskDFBClassifiers requires a 1x1x1 MaxPool3d output: "
                f"need H==kH, W==kW and kD<=D<kD+num_dc, got D,H,W={(D, H, W)}, "
                f"max_kernel={self.max_kernel}, num_dc={self.num_dc}")

        S_valid = kD * kH * kW          # flattened prefix covered by the pool window
        x = h.reshape(B, C, D * H * W)  # free collapse: no copy/transpose/pad/cast

        w = self.w_dfb_fused
        if w.dtype != h.dtype:          # match the streamed dtype (tiny one-time cast)
            w = w.astype(h.dtype)

        out = multitask_dfb_forward(x, w, self.w_head_t, self.b_head,
                                    s_valid=S_valid, s_tile=s_tile)   # (B, 2N)

        N = self.N_total
        out_ch, out_max = out[:, :N], out[:, N:]
        h_ch, h_max = [], []
        off = 0
        for n_cls in self.num_classes:
            h_ch.append(out_ch[:, off:off + n_cls])
            h_max.append(out_max[:, off:off + n_cls])
            off += n_cls
        return h_ch, h_max


def _reference(layer, h):
    """Pure-JAX reference (f32, HIGHEST precision)."""
    kD, kH, kW = layer.max_kernel
    B = h.shape[0]
    x = h[:, :, :kD, :kH, :kW].astype(jnp.float32)
    S = kD * kH * kW
    x = x.reshape(B, layer.in_channels, S)                  # (B, C, S)
    hi = jax.lax.Precision.HIGHEST
    h_ch, h_max = [], []
    for i, n_cls in enumerate(layer.num_classes):
        w = layer.w_dfb[i]                                  # (K_i, C)
        y = jnp.einsum('kc,bcs->bks', w, x, precision=hi)   # 1x1x1 conv
        m = y.max(axis=-1)                                  # global max pool
        x_max = jnp.einsum('bk,nk->bn', m, layer.w_cls[i], precision=hi) + layer.b_cls[i]
        x_ch = m.reshape(B, n_cls, layer.num_dc).mean(axis=-1)   # AvgPool1d
        h_ch.append(x_ch)
        h_max.append(x_max)
    return h_ch, h_max


if __name__ == "__main__":
    B, C = 2, 32
    D, H, W = 6, 8, 8
    max_kernel = (5, 8, 8)      # pooled output is 1x1x1 (depth window [0:5])
    num_classes = [4, 3, 0]     # the 0 entry is filtered out, as in PyTorch
    num_dc = 5

    key = jax.random.PRNGKey(0)
    k_h, k_p = jax.random.split(key)
    h = jax.random.normal(k_h, (B, C, D, H, W), jnp.float32)

    layer = MultitaskDFBClassifiersPallas(C, num_classes, max_kernel,
                                          dropout=0.5, num_dc=num_dc, key=k_p)

    # Default path: one full-extent spatial block (no running max, no masking).
    h_ch, h_max = layer(h)
    jax.block_until_ready(h_ch)
    jax.block_until_ready(h_max)

    # Forced s_tile=128: exercises the multi-tile running-max accumulator and
    # the statically-sliced partial last tile (S_valid=320 -> tiles 128/128/64).
    h_ch2, h_max2 = layer(h, s_tile=128)
    jax.block_until_ready(h_ch2)
    jax.block_until_ready(h_max2)

    ref_ch, ref_max = _reference(layer, h)

    ok = len(h_ch) == len(ref_ch) == 2 and len(h_max) == len(ref_max) == 2
    for got_list, ref_list in ((h_ch, ref_ch), (h_max, ref_max),
                               (h_ch2, ref_ch), (h_max2, ref_max)):
        for got, ref in zip(got_list, ref_list):
            ok &= got.shape == ref.shape
            ok &= bool(jnp.allclose(got, ref, atol=2e-3, rtol=2e-3))

    print("KERNEL_OK" if ok else "KERNEL_MISMATCH")
</pallas_src>

<mosaic_0001>
module attributes {stable_mosaic.version = 11 : i64} {
  func.func @_dfb_kernel(%arg0: i32, %arg1: i32, %arg2: memref<1x32x384xf32, #tpu.memory_space<vmem>>, %arg3: memref<35x32xf32, #tpu.memory_space<vmem>>, %arg4: memref<14x35xf32, #tpu.memory_space<vmem>>, %arg5: memref<14x1xf32, #tpu.memory_space<vmem>>, %arg6: memref<1x14x1xf32, #tpu.memory_space<vmem>>, %arg7: memref<35x1xf32, #tpu.memory_space<vmem>>) attributes {dimension_semantics = [#tpu.dimension_semantics<parallel>, #tpu.dimension_semantics<arbitrary>], iteration_bounds = array<i64: 2, 1>, scalar_prefetch = 0 : i64, scratch_operands = 1 : i64, tpu.core_type = #tpu.core_type<tc>, window_params = [{transform_indices = @transform_0, window_bounds = array<i64: 1, 32, 384>}, {pipeline_mode = #tpu.pipeline_mode<synchronous>, transform_indices = @transform_1, window_bounds = array<i64: 35, 32>}, {pipeline_mode = #tpu.pipeline_mode<synchronous>, transform_indices = @transform_2, window_bounds = array<i64: 14, 35>}, {pipeline_mode = #tpu.pipeline_mode<synchronous>, transform_indices = @transform_3, window_bounds = array<i64: 14, 1>}, {transform_indices = @transform_4, window_bounds = array<i64: 1, 14, 1>}]} {
    %c0 = arith.constant 0 : index
    %c0_0 = arith.constant 0 : index
    %0 = vector.load %arg3[%c0, %c0_0] : memref<35x32xf32, #tpu.memory_space<vmem>>, vector<35x32xf32>
    %c0_1 = arith.constant 0 : index
    %c0_2 = arith.constant 0 : index
    %c0_3 = arith.constant 0 : index
    %1 = vector.load %arg2[%c0_1, %c0_2, %c0_3] : memref<1x32x384xf32, #tpu.memory_space<vmem>>, vector<1x32x384xf32>
    %2 = vector.shape_cast %1 : vector<1x32x384xf32> to vector<32x384xf32>
    %cst = arith.constant dense<0.000000e+00> : vector<35x384xf32>
    %3 = tpu.matmul %0, %2, %cst {dimension_numbers = #tpu.dot_dimension_numbers<[1], [0], [0], [1], [0, 0, 1, 1], [], []>} : vector<35x32xf32>, vector<32x384xf32>, vector<35x384xf32> -> vector<35x384xf32>
    %4 = vector.extract_strided_slice %3 {offsets = [0, 0], sizes = [35, 320], strides = [1, 1]} : vector<35x384xf32> to vector<35x320xf32>
    %cst_4 = arith.constant dense<0xFF800000> : vector<35xf32>
    %5 = vector.multi_reduction <maximumf>, %4, %cst_4 [1] : vector<35x320xf32> to vector<35xf32>
    %6 = vector.shape_cast %5 : vector<35xf32> to vector<35x1xf32>
    %c0_5 = arith.constant 0 : index
    %c0_6 = arith.constant 0 : index
    %7 = vector.load %arg4[%c0_5, %c0_6] : memref<14x35xf32, #tpu.memory_space<vmem>>, vector<14x35xf32>
    %cst_7 = arith.constant dense<0.000000e+00> : vector<14x1xf32>
    %8 = tpu.matmul %7, %6, %cst_7 {dimension_numbers = #tpu.dot_dimension_numbers<[1], [0], [0], [1], [0, 0, 1, 1], [], []>} : vector<14x35xf32>, vector<35x1xf32>, vector<14x1xf32> -> vector<14x1xf32>
    %c0_8 = arith.constant 0 : index
    %c0_9 = arith.constant 0 : index
    %9 = vector.load %arg5[%c0_8, %c0_9] : memref<14x1xf32, #tpu.memory_space<vmem>>, vector<14x1xf32>
    %10 = arith.addf %8, %9 : vector<14x1xf32>
    %11 = vector.shape_cast %10 : vector<14x1xf32> to vector<1x14x1xf32>
    %c0_10 = arith.constant 0 : index
    %c0_11 = arith.constant 0 : index
    %c0_12 = arith.constant 0 : index
    %12 = vector.load %arg6[%c0_10, %c0_11, %c0_12] : memref<1x14x1xf32, #tpu.memory_space<vmem>>, vector<1x14x1xf32>
    tpu.vector_store %arg6[%c0_10, %c0_11, %c0_12], %11 {strides = array<i32>} : memref<1x14x1xf32, #tpu.memory_space<vmem>>, vector<1x14x1xf32>,
    return
  }
  func.func @transform_0(%arg0: i32, %arg1: i32) -> (i32, i32, i32) {
    %c0_i32 = arith.constant 0 : i32
    %c0_i32_0 = arith.constant 0 : i32
    return %arg0, %c0_i32, %arg1 : i32, i32, i32
  }
  func.func @transform_1(%arg0: i32, %arg1: i32) -> (i32, i32) {
    %c0_i32 = arith.constant 0 : i32
    %c0_i32_0 = arith.constant 0 : i32
    %c0_i32_1 = arith.constant 0 : i32
    return %c0_i32, %c0_i32_0 : i32, i32
  }
  func.func @transform_2(%arg0: i32, %arg1: i32) -> (i32, i32) {
    %c0_i32 = arith.constant 0 : i32
    %c0_i32_0 = arith.constant 0 : i32
    %c0_i32_1 = arith.constant 0 : i32
    return %c0_i32, %c0_i32_0 : i32, i32
  }
  func.func @transform_3(%arg0: i32, %arg1: i32) -> (i32, i32) {
    %c0_i32 = arith.constant 0 : i32
    %c0_i32_0 = arith.constant 0 : i32
    %c0_i32_1 = arith.constant 0 : i32
    return %c0_i32, %c0_i32_0 : i32, i32
  }
  func.func @transform_4(%arg0: i32, %arg1: i32) -> (i32, i32, i32) {
    %c0_i32 = arith.constant 0 : i32
    %c0_i32_0 = arith.constant 0 : i32
    %c0_i32_1 = arith.constant 0 : i32
    return %arg0, %c0_i32, %c0_i32_0 : i32, i32, i32
  }
}

</mosaic_0001>

<bundles_post_ra>
// kernel: tpu_custom_call.1
= control target key start
LH: loop header
LB: loop body
LE: loop exit
PB: predicated region body
PF: predicated region fallthrough
CT: control target
= control target key end

     0   :  { %9 = vsyncpa [#allocation4], 0  ;;  %s1095_s0 = inlined_call_operand.hbm [shape: f32[2,32,384], index: 0, kind: input, shape index: {}]   ;;  %s1096_s1 = inlined_call_operand.vmem [shape: f32[35,32], index: 1, kind: input, shape index: {}]   ;;  %s1097_s2 = inlined_call_operand.vmem [shape: f32[14,35], index: 2, kind: input, shape index: {}]   ;;  %s1098_s3 = inlined_call_operand.vmem [shape: f32[14,1], index: 3, kind: input, shape index: {}]   ;;  %s1099_s4 = inlined_call_operand.vmem [shape: f32[2,14,1], index: 4, kind: output, shape index: {}]  }
   0x1   :  { %11 = vsyncpa [#allocation4 + $0x1], 0  ;;  %s925_s15 = smov 0   ;;  %s927_s16 = smov 0  }
   0x2   :  { %s929_s17 = smov 0   ;;  %s931_s18 = smov 0  }
   0x3   :  { %s933_s19 = smov 0   ;;  %s935_s20 = smov 0  }
   0x4 LB: > { %s651_s21 = sadd.s32 4294967295, %s892_s20   ;;  %s29_s22 = sadd.s32 1, %s888_s19  ;;  %s892_s20 = sphi %s935_s20, %s17_s20   ;;  %s888_s19 = sphi %s933_s19, %s1106_s19   ;;  %s884_s18 = sphi %s931_s18, %s1105_s18   ;;  %s880_s17 = sphi %s929_s17, %s1104_s17   ;;  %s876_s16 = sphi %s927_s16, %s1103_s16   ;;  %s872_s15 = sphi %s925_s15, %s1102_s15  }
   0x5   : > { %p31_p0 = scmp.ge.s32.totalorder %s29_s22, 2  ;;  %s38_s23 = sadd.s32 1, %s880_s17 }
   0x6   : > { %p45_p1 = scmp.ne.s32.totalorder %s880_s17, %s876_s16  ;;  %p46_p2 = scmp.eq.s32.totalorder %s892_s20, 0 }
   0x7   : > { %s1108_s22 = smov (%p31_p0, %s29_s22), 0  ;;  %p51_p4 = scmp.ne.s32.totalorder %s876_s16, %s872_s15 }
   0x8   : > { %p47_p3 = por %p46_p2, %p45_p1  ;;  %s33_s24 = ssub.s32 %s888_s19, %s1108_s22 }
   0x9   : > { %p52_p5 = scmp.eq.s32.totalorder %s651_s21, 0  ;;  %p36_p6 = scmp.eq.s32.totalorder %s33_s24, 0 }
   0xa   : > { %p758_p8 = scmp.lt.s32.totalorder %s892_s20, 2  ;;  %s173_s27 = sand.u32 1, %s880_s17  }
   0xb   : > { %p964_p7 = por %p52_p5, %p51_p4  ;;  %s750_s28 = smul.u32 1536, %s888_s19 }
   0xc   : > { %s970_s26 = scalar_select %p36_p6, %s880_s17, %s38_s23  }
   0xd   : > { %s749_s29 = smul.u32 96, %s173_s27  ;;  %s977_s6 = scalar_lea.hbm %s1095_s0, %s750_s28 }
   0xe   : > { %p979_p9 = pnand %p758_p8, %p47_p3  ;;  %s985_s10 = scalar_lea.sflag [#allocation4], %s173_s27 }
   0xf   : > { %s177_s8 = scalar_lea.vmem [#allocation3], %s749_s29  ;;  %s812_s11 = scalar_lea.hbm %s977_s6, 1536 }
  0x10   : > { %s186_s9 = sshll.u32 %s177_s8, 4  ;;  %p813_p10 = scmp.ne.s32.totalorder %s977_s6, %s812_s11  ;;  %s983_s9 = int_to_ptr.vmem [resolvable:$true] %s186_s9 }
  0x11   : > { %p814_p11 = pneg %p979_p9  ;;  %s817_s14 = scalar_lea.hbm %s1095_s0, 3072 }
  0x12   : > { %p818_p0 = scmp.lt.u32.totalorder %s977_s6, %s1095_s0  ;;  %p819_p1 = scmp.lt.u32.totalorder %s817_s14, %s812_s11 }
  0x13   : > { %p815_p12 = pnand %p814_p11, %p813_p10  ;;  %p821_p3 = scmp.lt.u32.totalorder %s812_s11, %s977_s6 }
  0x14   : > { %p820_p2 = por %p819_p1, %p818_p0 }
  0x15   : > { %p816_p13 = pneg %p815_p12 }
  0x16   : > { %p822_p4 = por %p821_p3, %p820_p2 }
  0x18   : > { %p823_p5 = pnand %p822_p4, %p816_p13 }
  0x1a   : > { %826 = shalt.err (!%p823_p5)
}
  0x1b   : > { %s827_s23 = scalar_lea.vmem %s983_s9, 1536  ;;  %s894_s24 = smov [#allocation3]  }
  0x1c   : > { %p828_p6 = scmp.ne.s32.totalorder %s983_s9, %s827_s23  ;;  %s832_s27 = sshll.u32 %s894_s24, 4  ;;  %s833_s27 = int_to_ptr.vmem [resolvable:$false] %s832_s27 }
  0x1d   : > { %s834_s28 = scalar_lea.vmem %s833_s27, 3072  ;;  %p835_p12 = scmp.lt.s32.totalorder %s983_s9, %s833_s27 }
  0x1e   : > { %p830_p8 = pnand %p828_p6, %p814_p11  ;;  %p836_p0 = scmp.lt.s32.totalorder %s834_s28, %s827_s23 }
  0x20   : > { %p831_p10 = pneg %p830_p8  ;;  %p837_p1 = por %p836_p0, %p835_p12 }
  0x22   : > { %p838_p2 = pnand %p837_p1, %p831_p10 }
  0x24   : > { %841 = shalt.err (!%p838_p2)
}
  0x25   : > { %s895_s29 = smov 384   ;;  %s896_s30 = smov 24  }
  0x26   : > { %757 = dma.hbm_to_vmem [thread:$0]  (!%p979_p9), %s977_s6, 1536, %s983_s9, %s985_s10, %s895_s29, %s895_s29, %s896_s30  }
  0x27   : > { %p656_p11 = scmp.ge.s32.totalorder %s892_s20, 1  ;;  %p194_p13 = scmp.lt.s32.totalorder %s892_s20, 3 }
  0x29   : > { %p195_p3 = pnand %p656_p11, %p194_p13 }
  0x2a   : > { %s200_s5 = sand.u32 (!%p195_p3), 1, %s876_s16  }
  0x2b   : > { %198 = sbr.rel (%p195_p3) target bundleno = 657 (0x291), region = 36  ;;  %s201_s11 = scalar_lea.sflag (!%p195_p3), [#allocation4], %s200_s5 }
  0x2c   : > { %s751_s8 = smul.u32 (!%p195_p3), 96, %s200_s5 }
  0x2e   : > { %s204_s12 = scalar_lea.vmem (!%p195_p3), [#allocation3], %s751_s8 }
  0x32   : > { %867 = dma.done.wait (%p964_p7), %s201_s11, 1536  }
  0x33   : > { %869 = vsyncadd (%p964_p7), %s201_s11, 4294965760  ;;  %v897_v0 = vmov 0.0|0.0   ;;  %v898_v1 = vmov 0.0   ;;  %vm899_vm0 = vmmov 0   ;;  %v241_v2 = vld [vmem:[%s204_s12 + $0x8] sm:$0xff]  ;;  %v244_v3 = vld [vmem:[%s204_s12 + $0x20] sm:$0xff] }
  0x34   : > { %735 = vmatprep.subr.bf16.mxu1 %v897_v0  ;;  %332 = vmatprep.mubr.f32.mxu0 %v898_v1  ;;  %v240_v4 = vld [vmem:[%s204_s12] sm:$0xff]  ;;  %v727_v5 = vpack.c.bf16 %v244_v3, %v241_v2  ;;  %v243_v6 = vld [vmem:[%s204_s12 + $0x18] sm:$0xff]  ;;  %v242_v7 = vld [vmem:[%s204_s12 + $0x10] sm:$0xff]  ;;  %vm252_vm1 = vcmask 261120   ;;  %vm454_vm2 = vcmask 523264   ;;  %vm474_vm3 = vcmask 1042432  }
  0x35   : > { %699 = vmatprep.mubr.msk.f32.mxu1 %vm899_vm0, %v898_v1  ;;  %v245_v8 = vld [vmem:[%s204_s12 + $0x28] sm:$0xff]  ;;  %v729_v9 = vpack.c.bf16 %v243_v6, %v240_v4  ;;  %v247_v11 = vld [vmem:[%s204_s12 + $0x38] sm:$0xff]  ;;  %v250_v12 = vld [vmem:[%s204_s12 + $0x50] sm:$0xff]  ;;  %vm478_vm4 = vcmask 518144   ;;  %vm487_vm5 = vcmask 285696   ;;  %p230_p7 = scmp.lt.s32.totalorder %s884_s18, 1 }
  0x36   : > { %v736_v10 = vpack.c.bf16 %v245_v8, %v242_v7  ;;  %v246_v13 = vld [vmem:[%s204_s12 + $0x30] sm:$0xff]  ;;  %728 = vmatprep.subr.bf16.mxu0 %v727_v5  ;;  %v731_v14 = vpack.c.bf16 %v250_v12, %v247_v11  ;;  %v249_v15 = vld [vmem:[%s204_s12 + $0x48] sm:$0xff]  ;;  %v248_v16 = vld [vmem:[%s204_s12 + $0x40] sm:$0xff]  ;;  %vm574_vm6 = vcmask 5120   ;;  %vm572_vm7 = vcmask 7168  }
  0x37   : > { %v251_v17 = vld [vmem:[%s204_s12 + $0x58] sm:$0xff]  ;;  %730 = vmatpush1.bf16.msra.mxu0 %v729_v9  ;;  %v733_v18 = vpack.c.bf16 %v249_v15, %v246_v13  ;;  %v235_v20 = vld [vmem:[%s1096_s1] sm:$0xff]  ;;  %v236_v21 = vld [vmem:[%s1096_s1 + $0x8] sm:$0xff]  ;;  %s1110_s18 = smov (!%p230_p7, %s884_s18), 1 }
  0x38   : > { %737 = vmatpush3.bf16.msra.mxu1 %v736_v10  ;;  %v739_v19 = vpack.c.bf16 %v251_v17, %v248_v16  ;;  %732 = vmatprep.subr.bf16.mxu0 %v731_v14  ;;  %v237_v22 = vld [vmem:[%s1096_s1 + $0x10] sm:$0xff]  ;;  %v238_v23 = vld [vmem:[%s1096_s1 + $0x18] sm:$0xff]  ;;  %v239_v24 = vld [vmem:[%s1096_s1 + $0x20] sm:$0x7]  ;;  %s674_s30 = sshll.u32 %s1110_s18, 4 }
  0x39   : > { %738 = vmatprep.subr.bf16.mxu1 %v897_v0  ;;  %v483_v62 = vld [vmem:[%s1097_s2] sm:$0xff]  ;;  %v484_v6 = vld [vmem:[%s1097_s2 + $0x8] sm:$0x3f]  ;;  %s234_s7 = scalar_lea.vmem %s1099_s4, %s674_s30 }
  0x3a   : > { %v486_v7 = vld [vmem:[%s1098_s3 + $0x8] sm:$0x3f]  ;;  %v485_v8 = vld [vmem:[%s1098_s3] sm:$0xff] }
  0x3b   : > { %734 = vmatpush1.bf16.msra.mxu0 %v733_v18 }
  0x3c   : > { %740 = vmatpush3.bf16.msra.mxu1 %v739_v19 }
  0x3e   : > { %659 = vmatmul.mubr.msk.f32.vlgmr.msra.gmra.mrb[0].mxu0 %vm252_vm1, %v235_v20 }
  0x3f   : > { %700 = vmatmul.mubr.msk.f32.vlgmr.msra.gmra.mrb[0].mxu1 %vm252_vm1, %v235_v20  ;;  %338 = vmatprep.mubr.f32.mxu0 %v898_v1 }
  0x40   : > { %702 = vmatprep.mubr.msk.f32.mxu1 %vm899_vm0, %v898_v1 }
  0x42   : > { %660 = vmatmul.mubr.msk.f32.gmra.mrb[2].mxu0 %vm252_vm1, %v236_v21 }
  0x43   : > { %703 = vmatmul.mubr.msk.f32.gmra.mrb[2].mxu1 %vm252_vm1, %v236_v21  ;;  %344 = vmatprep.mubr.f32.mxu0 %v898_v1 }
  0x44   : > { %705 = vmatprep.mubr.msk.f32.mxu1 %vm899_vm0, %v898_v1 }
  0x46   : > { %661 = vmatmul.mubr.msk.f32.gmra.mrb[4].mxu0 %vm252_vm1, %v237_v22 }
  0x47   : > { %706 = vmatmul.mubr.msk.f32.gmra.mrb[4].mxu1 %vm252_vm1, %v237_v22  ;;  %350 = vmatprep.mubr.f32.mxu0 %v898_v1 }
  0x48   : > { %708 = vmatprep.mubr.msk.f32.mxu1 %vm899_vm0, %v898_v1 }
  0x4a   : > { %662 = vmatmul.mubr.msk.f32.gmra.mrb[6].mxu0 %vm252_vm1, %v238_v23 }
  0x4b   : > { %709 = vmatmul.mubr.msk.f32.gmra.mrb[6].mxu1 %vm252_vm1, %v238_v23  ;;  %356 = vmatprep.mubr.f32.mxu0 %v898_v1 }
  0x4c   : > { %711 = vmatprep.mubr.msk.f32.mxu1 %vm899_vm0, %v898_v1 }
  0x4e   : > { %663 = vmatmul.mubr.msk.f32.gmra.mrb[8].mxu0 %vm252_vm1, %v239_v24 }
  0x4f   : > { %712 = vmatmul.mubr.msk.f32.gmra.mrb[8].mxu1 %vm252_vm1, %v239_v24  ;;  %724 = vmatprep.mubr.msk.f32.mxu0 %vm487_vm5, %v483_v62 }
 0x111   : > { %v334_v25 = vpop.f32.mrb[0].mxu0 }
 0x112   : > { %v429_v26 = vpop.f32.mrb[0].mxu1  ;;  %v336_v27 = vpop.f32.mrb[1].mxu0 }
 0x113   : > { %v455_v28 = vsel %vm454_vm2, %v429_v26, -inf  ;;  %v701_v29 = vpop.f32.mrb[1].mxu1  ;;  %v453_v30 = vmax.f32 %v334_v25, %v336_v27 }
 0x115   : > { %v340_v31 = vpop.f32.mrb[2].mxu0  ;;  %v456_v33 = vmax.f32 %v453_v30, %v455_v28 }
 0x116   : > { %v434_v32 = vpop.f32.mrb[2].mxu1  ;;  %v342_v34 = vpop.f32.mrb[3].mxu0 }
 0x117   : > { %v460_v35 = vsel %vm454_vm2, %v434_v32, -inf  ;;  %v704_v36 = vpop.f32.mrb[3].mxu1  ;;  %v459_v37 = vmax.f32 %v340_v31, %v342_v34  ;;  %457 = vmax.xlane.f32.xlu0 %v456_v33 }
 0x119   : > { %v346_v38 = vpop.f32.mrb[4].mxu0  ;;  %v461_v40 = vmax.f32 %v459_v37, %v460_v35 }
 0x11a   : > { %v439_v39 = vpop.f32.mrb[4].mxu1  ;;  %v348_v41 = vpop.f32.mrb[5].mxu0 }
 0x11b   : > { %v465_v42 = vsel %vm454_vm2, %v439_v39, -inf  ;;  %v707_v43 = vpop.f32.mrb[5].mxu1  ;;  %v464_v44 = vmax.f32 %v346_v38, %v348_v41  ;;  %462 = vmax.xlane.f32.xlu0 %v461_v40 }
 0x11d   : > { %v352_v45 = vpop.f32.mrb[6].mxu0  ;;  %v466_v47 = vmax.f32 %v464_v44, %v465_v42 }
 0x11e   : > { %v444_v46 = vpop.f32.mrb[6].mxu1  ;;  %v354_v48 = vpop.f32.mrb[7].mxu0 }
 0x11f   : > { %v470_v49 = vsel %vm454_vm2, %v444_v46, -inf  ;;  %v710_v50 = vpop.f32.mrb[7].mxu1  ;;  %v469_v51 = vmax.f32 %v352_v45, %v354_v48  ;;  %467 = vmax.xlane.f32.xlu1 %v466_v47 }
 0x121   : > { %v471_v52 = vmax.f32 %v469_v51, %v470_v49  ;;  %v358_v53 = vpop.f32.mrb[8].mxu0 }
 0x122   : > { %v449_v54 = vpop.f32.mrb[8].mxu1  ;;  %v475_v55 = vsel %vm474_vm3, %v358_v53, -inf  ;;  %v360_v56 = vpop.f32.mrb[9].mxu0 }
 0x123   : > { %v713_v57 = vpop.f32.mrb[9].mxu1  ;;  %472 = vmax.xlane.f32.xlu1 %v471_v52  ;;  %v476_v58 = vsel %vm474_vm3, %v360_v56, -inf  ;;  %v479_v59 = vsel %vm478_vm4, %v449_v54, -inf }
 0x124   : > { %v477_v60 = vmax.f32 %v475_v55, %v476_v58 }
 0x126   : > { %v480_v61 = vmax.f32 %v477_v60, %v479_v59 }
 0x128   : > { %481 = vmax.xlane.f32.xlu0 %v480_v61 }
 0x1a4   : > { %v458_v63 = vpop.xlane.xlu0 %457 }
 0x1a8   : > { %v463_v0 = vpop.xlane.xlu0 %462 }
 0x1a9   : > { %v741_v1 = vpack.c.bf16 %v463_v0, %v458_v63 }
 0x1ab   : > { %742 = vmatprep.subr.bf16.mxu0 %v741_v1 }
 0x1ac   : > { %744 = vmatpush3.bf16.msra.mxu0 %v741_v1  ;;  %v468_v2 = vpop.xlane.xlu1 %467 }
 0x1b0   : > { %v473_v3 = vpop.xlane.xlu1 %472 }
 0x1b1   : > { %v745_v4 = vpack.c.bf16 %v473_v3, %v468_v2 }
 0x1b3   : > { %746 = vmatprep.subr.bf16.mxu0 %v745_v4 }
 0x1b4   : > { %748 = vmatpush3.bf16.msra.mxu0 %v745_v4 }
 0x1b5   : > { %v482_v5 = vpop.xlane.xlu0 %481 }
 0x1b6   : > { %722 = vmatprep.subr.msk.mxu0 %vm474_vm3, %v482_v5 }
 0x1b8   : > { %723 = vmatpush3.msk.msra.mxu0 %vm474_vm3, %v482_v5 }
 0x1b9   : > { %725 = vmatmul.mubr.msk.f32.vlgmr.msra.gmra.mrb[10].mxu0 %vm487_vm5, %v484_v6 }
 0x28c   : > { %v726_v9 = vpop.f32.mrb[10].mxu0 }
 0x28d   : > { %v569_v10 = vadd.f32 %v726_v9, %v486_v7  ;;  %v563_v11 = vpop.f32.mrb[11].mxu0 }
 0x28e   : > { %v564_v12 = vadd.f32 %v563_v11, %v485_v8 }
 0x28f   : > { %575 = vst.msk [vmem:[%s234_s7 + $0x8] sm:$0x3f] %vm574_vm6, %v569_v10 }
 0x290   : > { %573 = vst.msk [vmem:[%s234_s7] sm:$0xff] %vm572_vm7, %v564_v12 }
 0x291 PF: > { %s17_s20 = sadd.s32 1, %s892_s20   ;;  %s1102_s15 = smov %s876_s16 }
 0x292   : > { %p14_p9 = scmp.ge.s32.totalorder %s17_s20, 4   ;;  %s1103_s16 = smov %s880_s17 }
 0x293   : > { %s1104_s17 = smov %s970_s26  ;;  %s1105_s18 = smov %s888_s19 }
 0x294   : > { %s1106_s19 = smov %s1108_s22  ;;  %16 = sbr.rel (!%p14_p9) target bundleno = 4 (0x4), region = 76 }
 0x29b   :  { %597 = vsyncpa [#allocation4], 1 }
 0x29c   :  { %599 = vsyncpa [#allocation4 + $0x1], 1 }

</bundles_post_ra>
